<compile_context>
chip_gen: v6e
topology: v6e:2x2x1
jax: 0.10.0
libtpu: 0.0.40
codegen_flags: <defaults>
</compile_context>

<pallas_src>
import jax
import jax.numpy as jnp
import numpy as np
from jax.experimental import pallas as pl
from jax.experimental.pallas import tpu as pltpu


def _round_up(n, m):
    return ((n + m - 1) // m) * m


def _seq2d_kernel(kind_ref, blk_ref, col_ref, x_ref, w_ref, b_ref, o_ref):
    # grid = (output row i, active-block slot t); t is the "+"-combiner reduction axis.
    i = pl.program_id(0)
    t = pl.program_id(1)

    @pl.when(t == 0)
    def _():
        o_ref[...] = jnp.zeros_like(o_ref)

    k = kind_ref[i, t]  # 0 = padding (no block), 1 = linear, 2 = identity

    @pl.when(k == 1)
    def _():
        # bf16 x bf16 matmul on the MXU, f32 accumulation; bias added in f32.
        o_ref[0] += (
            jnp.dot(x_ref[0], w_ref[0], preferred_element_type=jnp.float32)
            + b_ref[0]
        )

    @pl.when(k == 2)
    def _():
        # Identity block: plain VPU add, no weights involved.
        o_ref[0] += x_ref[0].astype(jnp.float32)


def sequential2d_pallas(kind, blk_id, col_id, x_pad, w_pack, b_pack):
    """kind/blk_id/col_id: (n_out, max_active) int32 scalar-prefetch tables;
    x_pad: (n_in, Bpad, Fpad) bf16; w_pack: (n_linear, Fpad, Fpad) bf16 (pre-transposed);
    b_pack: (n_linear, 1, Fpad) f32.  Returns (n_out, Bpad, Fpad) f32."""
    n_out, max_active = kind.shape
    _, bpad, fpad = x_pad.shape

    grid_spec = pltpu.PrefetchScalarGridSpec(
        num_scalar_prefetch=3,
        grid=(n_out, max_active),
        in_specs=[
            # x block for the active block's input column
            pl.BlockSpec((1, bpad, fpad), lambda i, t, kd, bk, cl: (cl[i, t], 0, 0)),
            # packed weight block (only linear blocks exist in this array)
            pl.BlockSpec((1, fpad, fpad), lambda i, t, kd, bk, cl: (bk[i, t], 0, 0)),
            # packed bias block
            pl.BlockSpec((1, 1, fpad), lambda i, t, kd, bk, cl: (bk[i, t], 0, 0)),
        ],
        out_specs=pl.BlockSpec((1, bpad, fpad), lambda i, t, kd, bk, cl: (i, 0, 0)),
    )
    return pl.pallas_call(
        _seq2d_kernel,
        grid_spec=grid_spec,
        out_shape=jax.ShapeDtypeStruct((n_out, bpad, fpad), jnp.float32),
        compiler_params=pltpu.CompilerParams(
            dimension_semantics=("parallel", "arbitrary")),
    )(kind, blk_id, col_id, x_pad, w_pack, b_pack)


def sequential2d_forward(blocks, X):
    """blocks[i][j] is None, ("identity",), or ("linear", W(out,in), b(out,)).
    X is a list of (batch, feat_j) arrays.  Returns a list (entry is None for empty rows)."""
    n_out, n_in = len(blocks), len(X)
    assert all(x is not None for x in X), "all input blocks must be provided"
    batch = X[0].shape[0]
    in_feats = [int(x.shape[1]) for x in X]

    # Infer each row's output width (all blocks in a row must agree for the '+' combiner).
    out_feats = []
    for row in blocks:
        of = None
        for j, blk in enumerate(row):
            if blk is None:
                continue
            cur = in_feats[j] if blk[0] == "identity" else int(blk[1].shape[0])
            assert of is None or of == cur, "row outputs must match for '+' combiner"
            of = cur
        out_feats.append(of)

    fmax = max(in_feats + [f for f in out_feats if f is not None] + [1])
    fpad = _round_up(fmax, 128)   # lane-dense
    bpad = _round_up(batch, 8)    # sublane-dense

    # Compress the block matrix into per-row lists of active blocks.
    actives = [[(j, blk) for j, blk in enumerate(row) if blk is not None] for row in blocks]
    max_active = max((len(a) for a in actives), default=0)
    if max_active == 0:
        return [None] * n_out

    kind = np.zeros((n_out, max_active), np.int32)    # 0=pad, 1=linear, 2=identity
    blk_id = np.zeros((n_out, max_active), np.int32)  # index into packed weight array
    col_id = np.zeros((n_out, max_active), np.int32)  # input block column j
    w_blocks, b_blocks = [], []
    for i, row_act in enumerate(actives):
        for t, (j, blk) in enumerate(row_act):
            col_id[i, t] = j
            if blk[0] == "identity":
                kind[i, t] = 2
                blk_id[i, t] = 0          # unused; must just be a valid packed index
            else:
                kind[i, t] = 1
                W = np.asarray(blk[1], np.float32)
                b = np.asarray(blk[2], np.float32)
                of, inf = W.shape
                wp = np.zeros((fpad, fpad), np.float32)
                wp[:inf, :of] = W.T       # store transposed: y = x @ Wt + b
                bp = np.zeros((1, fpad), np.float32)
                bp[0, :of] = b
                blk_id[i, t] = len(w_blocks)
                w_blocks.append(wp)
                b_blocks.append(bp)
    if not w_blocks:  # all-identity case: keep a single dummy weight block
        w_blocks = [np.zeros((fpad, fpad), np.float32)]
        b_blocks = [np.zeros((1, fpad), np.float32)]
    w_pack = np.stack(w_blocks)                      # (n_linear, Fpad, Fpad)
    b_pack = np.stack(b_blocks)                      # (n_linear, 1, Fpad)

    x_pad = np.zeros((n_in, bpad, fpad), np.float32)
    for j, x in enumerate(X):
        xj = np.asarray(x, np.float32)
        x_pad[j, :batch, : xj.shape[1]] = xj

    y_pad = sequential2d_pallas(
        jnp.asarray(kind), jnp.asarray(blk_id), jnp.asarray(col_id),
        jnp.asarray(x_pad, dtype=jnp.bfloat16),
        jnp.asarray(w_pack, dtype=jnp.bfloat16),
        jnp.asarray(b_pack, dtype=jnp.float32),
    )
    y_pad = jax.block_until_ready(y_pad)

    outs = []
    for i in range(n_out):
        if out_feats[i] is None:
            outs.append(None)
        else:
            outs.append(y_pad[i, :batch, : out_feats[i]])
    return outs


if __name__ == "__main__":
    key = jax.random.PRNGKey(0)
    B = 2
    x_f, h_f, y_f = 16, 32, 8
    k1, k2, k3, k4, k5, k6, k7 = jax.random.split(key, 7)

    # Deterministic synthetic parameters (PyTorch Linear convention: W is (out, in)).
    W1 = jax.random.normal(k1, (h_f, x_f), jnp.float32) * 0.1
    b1 = jax.random.normal(k2, (h_f,), jnp.float32) * 0.1
    W2 = jax.random.normal(k3, (y_f, h_f), jnp.float32) * 0.1
    b2 = jax.random.normal(k4, (y_f,), jnp.float32) * 0.1

    X = [
        jax.random.normal(k5, (B, x_f), jnp.float32),
        jax.random.normal(k6, (B, h_f), jnp.float32),
        jax.random.normal(k7, (B, y_f), jnp.float32),
    ]

    ID = ("identity",)
    blocks = [
        [ID,                 None,               None],
        [("linear", W1, b1), None,               None],
        [None,               ("linear", W2, b2), None],
    ]

    outs = sequential2d_forward(blocks, X)

    # Pure-JAX reference of the PyTorch forward.  The kernel runs x/W in bf16 with f32
    # accumulation, so the reference uses bf16-rounded operands in f32 arithmetic.
    def bf16(a):
        return jnp.asarray(a, jnp.bfloat16).astype(jnp.float32)

    def apply_blk(blk, x):
        if blk[0] == "identity":
            return bf16(x)
        return jnp.matmul(bf16(x), bf16(blk[1]).T,
                          precision=jax.lax.Precision.HIGHEST) + blk[2]

    ref = []
    for row in blocks:
        acc = None
        for j, blk in enumerate(row):
            if blk is None:
                continue
            v = apply_blk(blk, X[j])
            acc = v if acc is None else acc + v
        ref.append(acc)

    for o, r in zip(outs, ref):
        if r is None:
            assert o is None
        else:
            np.testing.assert_allclose(np.asarray(o), np.asarray(r),
                                       rtol=1e-5, atol=1e-5)

    print("KERNEL_OK")
</pallas_src>

<mosaic_0001>
module attributes {stable_mosaic.version = 11 : i64} {
  func.func @_seq2d_kernel(%arg0: i32, %arg1: i32, %arg2: memref<3x1xi32, #tpu.memory_space<smem>>, %arg3: memref<3x1xi32, #tpu.memory_space<smem>>, %arg4: memref<3x1xi32, #tpu.memory_space<smem>>, %arg5: memref<1x8x128xbf16, #tpu.memory_space<vmem>>, %arg6: memref<1x128x128xbf16, #tpu.memory_space<vmem>>, %arg7: memref<1x1x128xf32, #tpu.memory_space<vmem>>, %arg8: memref<1x8x128xf32, #tpu.memory_space<vmem>>) attributes {dimension_semantics = [#tpu.dimension_semantics<parallel>, #tpu.dimension_semantics<arbitrary>], iteration_bounds = array<i64: 3, 1>, scalar_prefetch = 3 : i64, scratch_operands = 0 : i64, tpu.core_type = #tpu.core_type<tc>, window_params = [{transform_indices = @transform_0, window_bounds = array<i64: 1, 8, 128>}, {transform_indices = @transform_1, window_bounds = array<i64: 1, 128, 128>}, {transform_indices = @transform_2, window_bounds = array<i64: 1, 1, 128>}, {transform_indices = @transform_3, window_bounds = array<i64: 1, 8, 128>}]} {
    %c0_i32 = arith.constant 0 : i32
    %0 = arith.cmpi eq, %arg1, %c0_i32 : i32
    %1 = arith.extui %0 : i1 to i32
    %c0_i32_0 = arith.constant 0 : i32
    %2 = arith.cmpi ne, %1, %c0_i32_0 : i32
    scf.if %2 {
      %cst = arith.constant 0.000000e+00 : f32
      %12 = vector.broadcast %cst : f32 to vector<1x8x128xf32>
      %c0 = arith.constant 0 : index
      %c0_3 = arith.constant 0 : index
      %c0_4 = arith.constant 0 : index
      %13 = vector.load %arg8[%c0, %c0_3, %c0_4] : memref<1x8x128xf32, #tpu.memory_space<vmem>>, vector<1x8x128xf32>
      tpu.vector_store %arg8[%c0, %c0_3, %c0_4], %12 {strides = array<i32>} : memref<1x8x128xf32, #tpu.memory_space<vmem>>, vector<1x8x128xf32>,
    } else {
    }
    %3 = arith.index_cast %arg0 : i32 to index
    %4 = arith.index_cast %arg1 : i32 to index
    %5 = memref.load %arg2[%3, %4] : memref<3x1xi32, #tpu.memory_space<smem>>
    %c1_i32 = arith.constant 1 : i32
    %6 = arith.cmpi eq, %5, %c1_i32 : i32
    %7 = arith.extui %6 : i1 to i32
    %c0_i32_1 = arith.constant 0 : i32
    %8 = arith.cmpi ne, %7, %c0_i32_1 : i32
    scf.if %8 {
      %c0 = arith.constant 0 : index
      %c0_3 = arith.constant 0 : index
      %c0_4 = arith.constant 0 : index
      %12 = vector.load %arg8[%c0, %c0_3, %c0_4] : memref<1x8x128xf32, #tpu.memory_space<vmem>>, vector<1x8x128xf32>
      %13 = vector.shape_cast %12 : vector<1x8x128xf32> to vector<8x128xf32>
      %c0_5 = arith.constant 0 : index
      %c0_6 = arith.constant 0 : index
      %c0_7 = arith.constant 0 : index
      %14 = vector.load %arg5[%c0_5, %c0_6, %c0_7] : memref<1x8x128xbf16, #tpu.memory_space<vmem>>, vector<1x8x128xbf16>
      %15 = vector.shape_cast %14 : vector<1x8x128xbf16> to vector<8x128xbf16>
      %c0_8 = arith.constant 0 : index
      %c0_9 = arith.constant 0 : index
      %c0_10 = arith.constant 0 : index
      %16 = vector.load %arg6[%c0_8, %c0_9, %c0_10] : memref<1x128x128xbf16, #tpu.memory_space<vmem>>, vector<1x128x128xbf16>
      %17 = vector.shape_cast %16 : vector<1x128x128xbf16> to vector<128x128xbf16>
      %cst = arith.constant dense<0.000000e+00> : vector<8x128xf32>
      %18 = tpu.matmul %15, %17, %cst {dimension_numbers = #tpu.dot_dimension_numbers<[1], [0], [0], [1], [0, 0, 1, 1], [], []>} : vector<8x128xbf16>, vector<128x128xbf16>, vector<8x128xf32> -> vector<8x128xf32>
      %c0_11 = arith.constant 0 : index
      %c0_12 = arith.constant 0 : index
      %c0_13 = arith.constant 0 : index
      %19 = vector.load %arg7[%c0_11, %c0_12, %c0_13] : memref<1x1x128xf32, #tpu.memory_space<vmem>>, vector<1x1x128xf32>
      %20 = vector.shape_cast %19 : vector<1x1x128xf32> to vector<1x128xf32>
      %21 = vector.broadcast %20 : vector<1x128xf32> to vector<8x128xf32>
      %22 = arith.addf %18, %21 : vector<8x128xf32>
      %23 = arith.addf %13, %22 : vector<8x128xf32>
      %c0_14 = arith.constant 0 : index
      %c0_15 = arith.constant 0 : index
      %c0_16 = arith.constant 0 : index
      %24 = vector.load %arg8[%c0_14, %c0_15, %c0_16] : memref<1x8x128xf32, #tpu.memory_space<vmem>>, vector<1x8x128xf32>
      %25 = vector.shape_cast %24 : vector<1x8x128xf32> to vector<8x128xf32>
      %26 = vector.shape_cast %23 : vector<8x128xf32> to vector<1x8x128xf32>
      tpu.vector_store %arg8[%c0_14, %c0_15, %c0_16], %26 {strides = array<i32>} : memref<1x8x128xf32, #tpu.memory_space<vmem>>, vector<1x8x128xf32>,
    } else {
    }
    %c2_i32 = arith.constant 2 : i32
    %9 = arith.cmpi eq, %5, %c2_i32 : i32
    %10 = arith.extui %9 : i1 to i32
    %c0_i32_2 = arith.constant 0 : i32
    %11 = arith.cmpi ne, %10, %c0_i32_2 : i32
    scf.if %11 {
      %c0 = arith.constant 0 : index
      %c0_3 = arith.constant 0 : index
      %c0_4 = arith.constant 0 : index
      %12 = vector.load %arg8[%c0, %c0_3, %c0_4] : memref<1x8x128xf32, #tpu.memory_space<vmem>>, vector<1x8x128xf32>
      %13 = vector.shape_cast %12 : vector<1x8x128xf32> to vector<8x128xf32>
      %c0_5 = arith.constant 0 : index
      %c0_6 = arith.constant 0 : index
      %c0_7 = arith.constant 0 : index
      %14 = vector.load %arg5[%c0_5, %c0_6, %c0_7] : memref<1x8x128xbf16, #tpu.memory_space<vmem>>, vector<1x8x128xbf16>
      %15 = vector.shape_cast %14 : vector<1x8x128xbf16> to vector<8x128xbf16>
      %16 = arith.extf %15 : vector<8x128xbf16> to vector<8x128xf32>
      %17 = arith.addf %13, %16 : vector<8x128xf32>
      %c0_8 = arith.constant 0 : index
      %c0_9 = arith.constant 0 : index
      %c0_10 = arith.constant 0 : index
      %18 = vector.load %arg8[%c0_8, %c0_9, %c0_10] : memref<1x8x128xf32, #tpu.memory_space<vmem>>, vector<1x8x128xf32>
      %19 = vector.shape_cast %18 : vector<1x8x128xf32> to vector<8x128xf32>
      %20 = vector.shape_cast %17 : vector<8x128xf32> to vector<1x8x128xf32>
      tpu.vector_store %arg8[%c0_8, %c0_9, %c0_10], %20 {strides = array<i32>} : memref<1x8x128xf32, #tpu.memory_space<vmem>>, vector<1x8x128xf32>,
    } else {
    }
    return
  }
  func.func @transform_0(%arg0: i32, %arg1: i32, %arg2: memref<3x1xi32, #tpu.memory_space<smem>>, %arg3: memref<3x1xi32, #tpu.memory_space<smem>>, %arg4: memref<3x1xi32, #tpu.memory_space<smem>>) -> (i32, i32, i32) {
    %0 = arith.index_cast %arg0 : i32 to index
    %1 = arith.index_cast %arg1 : i32 to index
    %2 = memref.load %arg4[%0, %1] : memref<3x1xi32, #tpu.memory_space<smem>>
    %c0_i32 = arith.constant 0 : i32
    %c0_i32_0 = arith.constant 0 : i32
    %c0_i32_1 = arith.constant 0 : i32
    return %2, %c0_i32, %c0_i32_0 : i32, i32, i32
  }
  func.func @transform_1(%arg0: i32, %arg1: i32, %arg2: memref<3x1xi32, #tpu.memory_space<smem>>, %arg3: memref<3x1xi32, #tpu.memory_space<smem>>, %arg4: memref<3x1xi32, #tpu.memory_space<smem>>) -> (i32, i32, i32) {
    %0 = arith.index_cast %arg0 : i32 to index
    %1 = arith.index_cast %arg1 : i32 to index
    %2 = memref.load %arg3[%0, %1] : memref<3x1xi32, #tpu.memory_space<smem>>
    %c0_i32 = arith.constant 0 : i32
    %c0_i32_0 = arith.constant 0 : i32
    %c0_i32_1 = arith.constant 0 : i32
    return %2, %c0_i32, %c0_i32_0 : i32, i32, i32
  }
  func.func @transform_2(%arg0: i32, %arg1: i32, %arg2: memref<3x1xi32, #tpu.memory_space<smem>>, %arg3: memref<3x1xi32, #tpu.memory_space<smem>>, %arg4: memref<3x1xi32, #tpu.memory_space<smem>>) -> (i32, i32, i32) {
    %0 = arith.index_cast %arg0 : i32 to index
    %1 = arith.index_cast %arg1 : i32 to index
    %2 = memref.load %arg3[%0, %1] : memref<3x1xi32, #tpu.memory_space<smem>>
    %c0_i32 = arith.constant 0 : i32
    %c0_i32_0 = arith.constant 0 : i32
    %c0_i32_1 = arith.constant 0 : i32
    return %2, %c0_i32, %c0_i32_0 : i32, i32, i32
  }
  func.func @transform_3(%arg0: i32, %arg1: i32, %arg2: memref<3x1xi32, #tpu.memory_space<smem>>, %arg3: memref<3x1xi32, #tpu.memory_space<smem>>, %arg4: memref<3x1xi32, #tpu.memory_space<smem>>) -> (i32, i32, i32) {
    %c0_i32 = arith.constant 0 : i32
    %c0_i32_0 = arith.constant 0 : i32
    %c0_i32_1 = arith.constant 0 : i32
    return %arg0, %c0_i32, %c0_i32_0 : i32, i32, i32
  }
}

</mosaic_0001>

<bundles_post_ra>
// kernel: tpu_custom_call.1
= control target key start
LH: loop header
LB: loop body
LE: loop exit
PB: predicated region body
PF: predicated region fallthrough
CT: control target
= control target key end

     0   :  { %s1285_s0 = inlined_call_operand.vmem [shape: s32[3,1], index: 0, kind: input, shape index: {}]   ;;  %s1286_s3 = inlined_call_operand.vmem [shape: bf16[3,8,128], index: 3, kind: input, shape index: {}]   ;;  %s1287_s4 = inlined_call_operand.hbm [shape: bf16[2,128,128], index: 4, kind: input, shape index: {}]   ;;  %s1288_s5 = inlined_call_operand.vmem [shape: f32[2,1,128], index: 5, kind: input, shape index: {}]   ;;  %s1289_s6 = inlined_call_operand.hbm [shape: f32[3,8,128], index: 6, kind: output, shape index: {}]   ;;  %s1290_s1 = inlined_call_operand.vmem [shape: s32[3,1], index: 1, kind: input, shape index: {}]   ;;  %s1291_s2 = inlined_call_operand.vmem [shape: s32[3,1], index: 2, kind: input, shape index: {}]  }
   0x1   :  { %s11_s23 = sshll.u32 %s1285_s0, 4  ;;  %s15_s26 = sshll.u32 %s1290_s1, 4  ;;  %s12_s23 = int_to_ptr.vmem [resolvable:$true] %s11_s23  ;;  %s16_s26 = int_to_ptr.vmem [resolvable:$true] %s15_s26 }
   0x2   :  { %s820_s27 = scalar_lea.vmem %s12_s23, 64  ;;  %p825_p1 = scmp.lt.s32.totalorder %s12_s23, %s12_s23 }
   0x3   :  { %p821_p0 = scmp.ne.s32.totalorder %s12_s23, %s820_s27  ;;  %p826_p2 = scmp.lt.s32.totalorder %s820_s27, %s820_s27 }
   0x5   :  { %p827_p3 = por %p826_p2, %p825_p1 }
   0x7   :  { %p828_p4 = pnand %p827_p3, %p821_p0 }
   0x9   :  { %831 = shalt.err (!%p828_p4)  }
   0xa   :  { %s992_s28 = smov [#allocation3]   ;;  %s832_s29 = scalar_lea.vmem %s16_s26, 64 }
   0xb   :  { %14 = dma.vmem_to_smem %s12_s23, 64, %s992_s28, [#allocation2] }
   0xc   :  { %p833_p5 = scmp.ne.s32.totalorder %s16_s26, %s832_s29  ;;  %p837_p6 = scmp.lt.s32.totalorder %s16_s26, %s16_s26 }
   0xd   :  { %p838_p7 = scmp.lt.s32.totalorder %s832_s29, %s832_s29 }
   0xf   :  { %p839_p8 = por %p838_p7, %p837_p6 }
  0x11   :  { %p840_p9 = pnand %p839_p8, %p833_p5 }
  0x13   :  { %843 = shalt.err (!%p840_p9)  }
  0x14   :  { %s993_s0 = smov [#allocation4]   ;;  %s19_s7 = sshll.u32 %s1291_s2, 4  ;;  %s20_s7 = int_to_ptr.vmem [resolvable:$true] %s19_s7 }
  0x15   :  { %18 = dma.vmem_to_smem %s16_s26, 64, %s993_s0, [#allocation2] }
  0x16   :  { %s844_s8 = scalar_lea.vmem %s20_s7, 64  ;;  %p849_p11 = scmp.lt.s32.totalorder %s20_s7, %s20_s7 }
  0x17   :  { %p845_p10 = scmp.ne.s32.totalorder %s20_s7, %s844_s8  ;;  %p850_p12 = scmp.lt.s32.totalorder %s844_s8, %s844_s8 }
  0x19   :  { %p851_p13 = por %p850_p12, %p849_p11 }
  0x1b   :  { %p852_p0 = pnand %p851_p13, %p845_p10 }
  0x1d   :  { %855 = shalt.err (!%p852_p0)  }
  0x1e   :  { %s994_s9 = smov [#allocation5]  }
  0x1f   :  { %22 = dma.vmem_to_smem %s20_s7, 64, %s994_s9, [#allocation2] }
  0x20   :  { %946 = dma.done.wait [#allocation2], 192 }
  0x21   :  { %947 = vsyncadd [#allocation2], 4294967104 }
  0x22   :  { %24 = sfence }
  0x23   :  { %25 = vsyncpa [#allocation7], 0 }
  0x24   :  { %27 = vsyncpa [#allocation7 + $0x1], 0 }
  0x25   :  { %28 = vsyncpa [#allocation8], 0 }
  0x26   :  { %30 = vsyncpa [#allocation8 + $0x1], 0  ;;  %s1046_s10 = smov 0   ;;  %s1048_s2 = smov 0  }
  0x27   :  { %s1050_s11 = smov 0   ;;  %s1052_s12 = smov 0  }
  0x28   :  { %s1054_s13 = smov 0   ;;  %s1056_s14 = smov 0  }
  0x29   :  { %s1058_s15 = smov 0   ;;  %s1060_s16 = smov 0  }
  0x2a   :  { %s1062_s17 = smov 0  }
  0x2b LB: > { %1296 = sst [smem:[#allocation15_spill]] %s986_s16  ;;  %s648_s18 = sadd.s32 4294967295, %s990_s17   ;;  %s990_s17 = sphi %s1062_s17, %s36_s17   ;;  %s986_s16 = sphi %s1060_s16, %s1309_s16   ;;  %s982_s15 = sphi %s1058_s15, %s1308_s15   ;;  %s978_s14 = sphi %s1056_s14, %s1315_s14   ;;  %s974_s13 = sphi %s1054_s13, %s1314_s13   ;;  %s970_s12 = sphi %s1052_s12, %s1313_s12   ;;  %s966_s11 = sphi %s1050_s11, %s1312_s11   ;;  %s962_s2 = sphi %s1048_s2, %s1311_s2   ;;  %s958_s10 = sphi %s1046_s10, %s1310_s10  }
  0x2c   : > { %s649_s19 = sadd.s32 4294967294, %s990_s17   ;;  %s48_s20 = sadd.s32 1, %s986_s16 }
  0x2d   : > { %s652_s21 = sshll.u32 %s986_s16, 7  ;;  %p50_p1 = scmp.ge.s32.totalorder %s48_s20, 3 }
  0x2e   : > { %s101_s22 = sld [smem:[#allocation4 + %s652_s21]]  ;;  %s113_s23 = sadd.s32 1, %s978_s14 }
  0x2f   : > { %p120_p2 = scmp.ne.s32.totalorder %s978_s14, %s974_s13  ;;  %s1317_s20 = smov (%p50_p1, %s48_s20), 0 }
  0x30   : > { %1297 = sst [smem:[#allocation16_spill]] %s1317_s20  ;;  %p121_p3 = scmp.eq.s32.totalorder %s990_s17, 0 }
  0x31   : > { %p126_p4 = scmp.ne.s32.totalorder %s974_s13, %s970_s12  ;;  %s653_s24 = sshll.u32 %s1317_s20, 7 }
  0x32   : > { %p127_p5 = scmp.eq.s32.totalorder %s648_s18, 0  ;;  %s109_s25 = sld [smem:[#allocation4 + %s653_s24]] }
  0x33   : > { %p1103_p6 = por %p121_p3, %p120_p2  ;;  %s178_s28 = ssub.s32 %s986_s16, %s1317_s20 }
  0x34   : > { %p1107_p7 = por %p127_p5, %p126_p4  ;;  %p179_p8 = scmp.eq.s32.totalorder %s178_s28, 0 }
  0x35   : > { %s181_s29 = sadd.s32 1, %s966_s11  ;;  %p191_p9 = scmp.ne.s32.totalorder %s966_s11, %s962_s2 }
  0x36   : > { %s1299_s27 = scalar_select %p1107_p7, 1, 0 }
  0x37   : > { %p192_p10 = scmp.eq.s32.totalorder %s648_s18, 2  ;;  %p197_p12 = scmp.ne.s32.totalorder %s962_s2, %s958_s10 }
  0x38   : > { %s1117_s0 = scalar_select %p179_p8, %s966_s11, %s181_s29  }
  0x39   : > { %p1119_p11 = por %p192_p10, %p191_p9  ;;  %s110_s30 = ssub.s32 %s101_s22, %s109_s25 }
  0x3a   : > { %p198_p13 = scmp.eq.s32.totalorder %s649_s19, 2  ;;  %p111_p0 = scmp.eq.s32.totalorder %s110_s30, 0 }
  0x3b   : > { %s1300_s1 = scalar_select %p1119_p11, 1, 0 }
  0x3c   : > { %p1125_p1 = por %p198_p13, %p197_p12  ;;  %p730_p2 = scmp.lt.s32.totalorder %s990_s17, 3 }
  0x3d   : > { %s1131_s8 = scalar_select %p111_p0, %s978_s14, %s113_s23  }
  0x3e   : > { %s1301_s7 = scalar_select %p1125_p1, 1, 0 }
  0x3f   : > { %s241_s9 = sand.u32 1, %s978_s14   ;;  %p1136_p3 = pnand %p730_p2, %p1103_p6 }
  0x40   : > { %s658_s18 = sshll.u32 %s241_s9, 6  ;;  %s1319_s21 = smov (!%p1103_p6, %s652_s21), 0 }
  0x41   : > { %s714_s24 = scalar_select %p1103_p6, [#allocation4], [#allocation10] }
  0x42   : > { %s1323_s21 = smov (!%p730_p2, %s1319_s21), 0  ;;  %p662_p4 = scmp.ge.s32.totalorder %s990_s17, 1 }
  0x43   : > { %s1321_s24 = smov (!%p730_p2, %s714_s24), [#allocation11]  ;;  %s245_s22 = scalar_lea.vmem [#allocation6], %s658_s18 }
  0x44   : > { %s253_s19 = sld [smem:[%s1321_s24 + %s1323_s21]]  ;;  %s260_s23 = sshll.u32 %s245_s22, 4  ;;  %s1152_s23 = int_to_ptr.vmem [resolvable:$true] %s260_s23 }
  0x45   : > { %p290_p5 = scmp.lt.s32.totalorder %s990_s17, 4  ;;  %s1159_s21 = scalar_lea.sflag [#allocation7], %s241_s9 }
  0x46   : > { %p858_p9 = pneg %p1136_p3 }
  0x47   : > { %p1148_p8 = pnand %p662_p4, %p290_p5 }
  0x49   : > { %s1303_s25 = scalar_select %p1148_p8, 1, 0 }
  0x4a   : > { %s684_s28 = sshll.u32 %s253_s19, 10  ;;  %s861_s19 = scalar_lea.hbm %s1287_s4, 2048 }
  0x4b   : > { %s1157_s26 = scalar_lea.hbm %s1287_s4, %s684_s28 }
  0x4c   : > { %s856_s18 = scalar_lea.hbm %s1157_s26, 1024  ;;  %p862_p13 = scmp.lt.s32.totalorder %s1157_s26, %s1287_s4 }
  0x4d   : > { %p857_p6 = scmp.ne.s32.totalorder %s1157_s26, %s856_s18  ;;  %p863_p0 = scmp.lt.s32.totalorder %s861_s19, %s856_s18 }
  0x4f   : > { %p859_p10 = pnand %p858_p9, %p857_p6  ;;  %p864_p2 = por %p863_p0, %p862_p13 }
  0x51   : > { %p860_p12 = pneg %p859_p10 }
  0x53   : > { %p865_p4 = pnand %p864_p2, %p860_p12 }
  0x55   : > { %868 = shalt.err (!%p865_p4)
}
  0x56   : > { %s869_s9 = scalar_lea.vmem %s1152_s23, 1024  ;;  %s995_s28 = smov [#allocation6]  }
  0x57   : > { %p870_p5 = scmp.ne.s32.totalorder %s1152_s23, %s869_s9  ;;  %s874_s29 = sshll.u32 %s995_s28, 4  ;;  %s875_s29 = int_to_ptr.vmem [resolvable:$false] %s874_s29 }
  0x58   : > { %s876_s30 = scalar_lea.vmem %s875_s29, 2048  ;;  %p877_p10 = scmp.lt.s32.totalorder %s1152_s23, %s875_s29 }
  0x59   : > { %p872_p1 = pnand %p870_p5, %p858_p9  ;;  %p878_p11 = scmp.lt.s32.totalorder %s876_s30, %s869_s9 }
  0x5b   : > { %p873_p6 = pneg %p872_p1  ;;  %p879_p7 = por %p878_p11, %p877_p10 }
  0x5d   : > { %p880_p8 = pnand %p879_p7, %p873_p6 }
  0x5f   : > { %883 = shalt.err (!%p880_p8)
}
  0x60   : > { %s996_s16 = smov 64   ;;  %s997_s20 = smov 4  }
  0x61   : > { %725 = dma.hbm_to_vmem [thread:$0]  (!%p1136_p3), %s1157_s26, 1024, %s1152_s23, %s1159_s21, %s996_s16, %s996_s16, %s997_s20  }
  0x62   : > { %p1304_p9 = scmp.ne.s32.totalorder %s1303_s25, 0 }
  0x63   : > { %s296_s18 = sand.u32 (!%p1304_p9), 1, %s974_s13   ;;  %p1305_p7 = scmp.ne.s32.totalorder (!%p1304_p9), %s1299_s27, 0 }
  0x64   : > { %294 = sbr.rel (%p1304_p9) target bundleno = 393 (0x189), region = 32  ;;  %s663_s24 = sshll.u32 (!%p1304_p9), %s296_s18, 6 }
  0x65   : > { %s297_s22 = scalar_lea.sflag (!%p1304_p9), [#allocation7], %s296_s18  ;;  %s1183_s19 = scalar_lea.vmem (!%p1304_p9), [#allocation6], %s663_s24 }
  0x69   : > { %949 = dma.done.wait (%p1305_p7), %s297_s22, 1024  }
  0x6a   : > { %951 = vsyncadd (%p1305_p7), %s297_s22, 4294966272  ;;  %s1190_s12 = sshll.u32 %s982_s15, 7  ;;  %s343_s23 = sand.u32 1, %s962_s2   ;;  %v998_v0 = vmov 0.0  }
  0x6b   : > { %s353_s25 = sld [smem:[#allocation5 + %s1190_s12]]  ;;  %s664_s26 = sshll.u32 %s343_s23, 3 }
  0x6c   : > { %s381_s21 = sld [smem:[#allocation4 + %s1190_s12]]  ;;  %s1200_s28 = scalar_lea.vmem [#allocation9], %s664_s26 }
  0x6d   : > { %s1198_s9 = sld [smem:[#allocation3 + %s1190_s12]]  ;;  %398 = vst [vmem:[%s1200_s28] sm:$0xff] %v998_v0 }
  0x71   : > { %p354_p11 = scmp.lt.s32.totalorder %s353_s25, 2 }
  0x72   : > { %p382_p1 = scmp.lt.s32.totalorder %s381_s21, 1 }
  0x73   : > { %s1325_s25 = smov (!%p354_p11, %s353_s25), 2  ;;  %p669_p3 = scmp.ne.s32.totalorder %s1198_s9, 1 }
  0x74   : > { %s1327_s21 = smov (!%p382_p1, %s381_s21), 1  ;;  %s666_s15 = sshll.u32 %s1325_s25, 2 }
  0x75   : > { %s1208_s30 = scalar_lea.vmem %s1286_s3, %s666_s15  ;;  %s384_s18 = scalar_lea.vmem %s1288_s5, %s1327_s21 }
  0x76   : > { %410 = sbr.rel (%p669_p3) target bundleno = 355 (0x163), region = 44 }
  0x7b   : > { %v812_v1 = vld [vmem:[%s1183_s19 + $0x38] sm:$0xff]   ;;  %v999_v2 = vmov 0.0   ;;  %v813_v3 = vld [vmem:[%s1183_s19 + $0x30] sm:$0xff]   ;;  %vm1000_vm0 = vmmov 0   ;;  %v814_v4 = vld [vmem:[%s1183_s19 + $0x28] sm:$0xff]  }
  0x7c   : > { %694 = vmatprep.subr.bf16.mxu0 %v999_v2  ;;  %710 = vmatprep.mubr.msk.bf16.mxu0 %vm1000_vm0, %v999_v2  ;;  %v815_v5 = vld [vmem:[%s1183_s19 + $0x20] sm:$0xff]   ;;  %v816_v6 = vld [vmem:[%s1183_s19 + $0x18] sm:$0xff]   ;;  %v817_v7 = vld [vmem:[%s1183_s19 + $0x10] sm:$0xff]  }
  0x7d   : > { %695 = vmatpush3.bf16.msra.mxu0 %v812_v1  ;;  %v818_v8 = vld [vmem:[%s1183_s19 + $0x8] sm:$0xff]   ;;  %v819_v9 = vld [vmem:[%s1183_s19] sm:$0xff]  }
  0x7e   : > { %696 = vmatprep.subr.bf16.mxu0 %v999_v2  ;;  %v412_v10 = vld [vmem:[%s1208_s30] sm:$0xf] }
  0x7f   : > { %v670_v11 = vld [vmem:[%s384_s18] ss:$0 sm:$0xff] }
  0x80   : > { %v411_v12 = vld [vmem:[%s1200_s28] sm:$0xff] }
  0x81   : > { %697 = vmatpush3.bf16.msra.mxu0 %v813_v3 }
  0x82   : > { %698 = vmatprep.subr.bf16.mxu0 %v999_v2 }
  0x85   : > { %699 = vmatpush3.bf16.msra.mxu0 %v814_v4 }
  0x86   : > { %700 = vmatprep.subr.bf16.mxu0 %v999_v2 }
  0x89   : > { %701 = vmatpush3.bf16.msra.mxu0 %v815_v5 }
  0x8a   : > { %702 = vmatprep.subr.bf16.mxu0 %v999_v2 }
  0x8d   : > { %703 = vmatpush3.bf16.msra.mxu0 %v816_v6 }
  0x8e   : > { %704 = vmatprep.subr.bf16.mxu0 %v999_v2 }
  0x91   : > { %705 = vmatpush3.bf16.msra.mxu0 %v817_v7 }
  0x92   : > { %706 = vmatprep.subr.bf16.mxu0 %v999_v2 }
  0x95   : > { %707 = vmatpush3.bf16.msra.mxu0 %v818_v8 }
  0x96   : > { %708 = vmatprep.subr.bf16.mxu0 %v999_v2 }
  0x99   : > { %709 = vmatpush3.bf16.msra.mxu0 %v819_v9 }
  0x9c   : > { %711 = vmatmul.mubr.bf16.vlgmr.msra.gmra.mxu0 %v412_v10 }
 0x15c   : > { %v518_v13 = vpop.f32.mrf.mxu0 }
 0x15d   : > { %v519_v14 = vadd.f32 %v670_v11, %v518_v13 }
 0x15e   : > { %v712_v15 = vpop.f32.mrf.mxu0 }
 0x15f   : > { %v524_v16 = vadd.f32 %v519_v14, %v411_v12 }
 0x160   : > { %v521_v17 = vpop.f32.mrf.mxu0 }
 0x161   : > { %525 = vst [vmem:[%s1200_s28] sm:$0xff] %v524_v16 }
 0x162   : > { %v713_v18 = vpop.f32.mrf.mxu0 }
 0x163 PF: > { %p679_p8 = scmp.ne.s32.totalorder %s1198_s9, 2 }
 0x165   : > { %529 = sbr.rel (%p679_p8) target bundleno = 369 (0x171), region = 48 }
 0x16a   : > { %v530_v19 = vld [vmem:[%s1200_s28] sm:$0xff] }
 0x16b   : > { %v531_v20 = vld [vmem:[%s1208_s30] sm:$0xf] }
 0x16c   : > { %v532_v21 = vunpack.c.l.bf16 %v531_v20 }
 0x16e   : > { %v533_v22 = vadd.f32 %v532_v21, %v530_v19 }
 0x170   : > { %534 = vst [vmem:[%s1200_s28] sm:$0xff] %v533_v22 }
 0x171 PF: > { %s547_s26 = scalar_lea.hbm %s1289_s6, %s1190_s12  ;;  %s549_s21 = sshll.u32 %s1200_s28, 4  ;;  %s550_s21 = int_to_ptr.vmem [resolvable:$true] %s549_s21 }
 0x172   : > { %s536_s9 = scalar_lea.sflag [#allocation8], %s343_s23  ;;  %s884_s15 = scalar_lea.vmem %s550_s21, 128 }
 0x173   : > { %p885_p12 = scmp.ne.s32.totalorder %s550_s21, %s884_s15  ;;  %p1306_p13 = scmp.ne.s32.totalorder %s1300_s1, 0 }
 0x174   : > { %s1001_s27 = smov [#allocation9]  }
 0x175   : > { %p886_p0 = pnand %p885_p12, %p1306_p13  ;;  %s888_s29 = sshll.u32 %s1001_s27, 4  ;;  %s889_s29 = int_to_ptr.vmem [resolvable:$false] %s888_s29 }
 0x176   : > { %s890_s30 = scalar_lea.vmem %s889_s29, 256  ;;  %p891_p4 = scmp.lt.s32.totalorder %s550_s21, %s889_s29 }
 0x177   : > { %p887_p2 = pneg %p886_p0  ;;  %p892_p5 = scmp.lt.s32.totalorder %s890_s30, %s884_s15 }
 0x179   : > { %p893_p6 = por %p892_p5, %p891_p4 }
 0x17b   : > { %p894_p10 = pnand %p893_p6, %p887_p2 }
 0x17d   : > { %897 = shalt.err (!%p894_p10)
}
 0x17e   : > { %s898_s16 = scalar_lea.hbm %s547_s26, 128  ;;  %s902_s28 = scalar_lea.hbm %s1289_s6, 384 }
 0x17f   : > { %p899_p9 = scmp.ne.s32.totalorder %s547_s26, %s898_s16  ;;  %p903_p1 = scmp.lt.s32.totalorder %s547_s26, %s1289_s6 }
 0x180   : > { %p904_p3 = scmp.lt.s32.totalorder %s902_s28, %s898_s16 }
 0x181   : > { %p900_p7 = pnand %p899_p9, %p1306_p13 }
 0x182   : > { %p905_p8 = por %p904_p3, %p903_p1 }
 0x183   : > { %p901_p11 = pneg %p900_p7 }
 0x185   : > { %p906_p12 = pnand %p905_p8, %p901_p11 }
 0x187   : > { %909 = shalt.err (!%p906_p12)
}
 0x188   : > { %718 = dma.vmem_to_hbm [thread:$0]  (%p1306_p13), %s550_s21, 128, %s547_s26, %s536_s9  }
 0x189 PF: > { %p731_p0 = scmp.ge.s32.totalorder %s990_s17, 2  ;;  %s561_s24 = sand.u32 1, %s958_s10  }
 0x18a   : > { %p1307_p2 = scmp.ne.s32.totalorder %s1301_s7, 0  ;;  %s562_s22 = scalar_lea.sflag [#allocation8], %s561_s24 }
 0x18c   : > { %p727_p4 = pnand %p731_p0, %p1307_p2 }
 0x18e   : > { %p728_p5 = pneg %p727_p4 }
 0x190   : > { %953 = dma.done.wait (%p728_p5), %s562_s22, 128  }
 0x191   : > { %955 = vsyncadd (%p728_p5), %s562_s22, 4294967168  ;;  %s36_s17 = sadd.s32 1, %s990_s17   ;;  %s1308_s15 = sld [smem:[#allocation15_spill]] }
 0x192   : > { %p33_p6 = scmp.ge.s32.totalorder %s36_s17, 5   ;;  %s1309_s16 = sld [smem:[#allocation16_spill]] }
 0x193   : > { %s1310_s10 = smov %s962_s2  ;;  %s1311_s2 = smov %s966_s11 }
 0x194   : > { %s1312_s11 = smov %s1117_s0  ;;  %s1313_s12 = smov %s974_s13 }
 0x195   : > { %s1314_s13 = smov %s978_s14  ;;  %s1315_s14 = smov %s1131_s8 }
 0x196   :  { %35 = sbr.rel (!%p33_p6) target bundleno = 43 (0x2b), region = 95 }
 0x19b   :  { %567 = vsyncpa [#allocation7], 1 }
 0x19c   :  { %569 = vsyncpa [#allocation7 + $0x1], 1 }
 0x19d   :  { %570 = vsyncpa [#allocation8], 1 }
 0x19e   :  { %572 = vsyncpa [#allocation8 + $0x1], 1 }

</bundles_post_ra>
